<compile_context>
chip_gen: v7x
topology: tpu7x:2x2x1
jax: 0.10.0
libtpu: 0.0.40
codegen_flags: <defaults>
</compile_context>

<pallas_src>
import functools

import jax
import jax.numpy as jnp
from jax.experimental import pallas as pl
from jax.experimental.pallas import tpu as pltpu

STATE_DIM = 4
ACTION_DIM = 2
HIDDEN_DIM = 256
K_PAD = 8  # fc1 contraction padded to 8 (state+action = 6, pad cols are zero)


def _round_up(x, m):
    return ((x + m - 1) // m) * m


def _elementwise_dtype():
    """bf16 elementwise on chips with a bf16 VPU (v6e/v7x), f32 otherwise."""
    try:
        kind = jax.devices()[0].device_kind.lower()
    except Exception:  # pragma: no cover - be conservative
        return jnp.float32
    if ("v6" in kind) or ("v7" in kind):
        return jnp.bfloat16
    return jnp.float32


def qnet_kernel(x_ref, w1_ref, b1_ref, w2_ref, b2_ref, w3t_ref, b3_ref,
                out_ref, *, ew_dtype):
    # fc1: single merged K=8 matmul (torch.cat fused via pre-padded input and
    # zero-padded weight rows), f32 MXU accumulation.
    h1 = jnp.dot(x_ref[...], w1_ref[...], preferred_element_type=jnp.float32)
    h1 = jnp.maximum(h1.astype(ew_dtype) + b1_ref[...].astype(ew_dtype), 0.0)
    h1 = h1.astype(jnp.bfloat16)

    # fc2 + ReLU (bf16 MXU operands, f32 accumulation).
    h2 = jnp.dot(h1, w2_ref[...], preferred_element_type=jnp.float32)
    h2 = jnp.maximum(h2.astype(ew_dtype) + b2_ref[...].astype(ew_dtype), 0.0)
    h2 = h2.astype(jnp.bfloat16)

    # fc3 emitted lane-dense: contract the hidden axis of (1,H) x (tb,H) so the
    # degenerate N=1 head produces a full-lane (1, tb) slab (unmasked vst)
    # instead of a masked 1-lane-wide (tb, 1) store.  (If a bundle dump shows a
    # materialized h2 transpose, swap for pl.dot(w3t, h2, trans_b=True).)
    q = jax.lax.dot_general(
        w3t_ref[...], h2,
        dimension_numbers=(((1,), (1,)), ((), ())),
        preferred_element_type=jnp.float32)                     # (1, tb)
    out_ref[...] = q + b3_ref[...]


def qnetwork_forward(state, action, params):
    """state: (B, STATE_DIM), action: (B, ACTION_DIM) -> (B, 1) float32."""
    w1, b1, w2, b2, w3t, b3 = params
    B = state.shape[0]

    # Batch tile: 128..1024 rows per grid step (multiple of 128).  For batches
    # above one tile, force >= 2 grid steps so the "parallel" axis shards
    # across both TensorCores on v7x; large tiles keep each step well above the
    # ~600-cycle fixed per-step pipeline overhead while the f32 intermediates
    # (<= ~2 MB at tb=1024) stay far below any generation's VMEM.
    Bp0 = _round_up(B, 128)
    if Bp0 <= 128:
        tb = 128
    else:
        tb = min(1024, max(128, (Bp0 // 2) // 128 * 128))
    Bp = _round_up(B, tb)

    # Fused concat: one (B, 6) concat + zero-pad to (Bp, 8) in the wrapper,
    # giving the kernel a single activation DMA stream per step.
    x = jnp.concatenate([state, action], axis=-1)
    x = jnp.pad(x, ((0, Bp - B), (0, K_PAD - x.shape[-1])))
    x = x.astype(jnp.bfloat16)

    grid = (Bp // tb,)
    ew_dtype = _elementwise_dtype()

    def resident(arr):
        # Weights/biases: constant block index -> stay VMEM-resident.
        return pl.BlockSpec(arr.shape, lambda i: (0, 0))

    flops = 2 * Bp * (K_PAD * HIDDEN_DIM + HIDDEN_DIM * HIDDEN_DIM + HIDDEN_DIM)
    bytes_accessed = (
        x.size * 2
        + (w1.size + w2.size + w3t.size) * 2
        + (b1.size + b2.size + b3.size) * 4
        + Bp * 4)

    out = pl.pallas_call(
        functools.partial(qnet_kernel, ew_dtype=ew_dtype),
        out_shape=jax.ShapeDtypeStruct((1, Bp), jnp.float32),
        grid=grid,
        in_specs=[pl.BlockSpec((tb, K_PAD), lambda i: (i, 0)),
                  resident(w1), resident(b1),
                  resident(w2), resident(b2),
                  resident(w3t), resident(b3)],
        out_specs=pl.BlockSpec((1, tb), lambda i: (0, i)),
        compiler_params=pltpu.CompilerParams(
            dimension_semantics=("parallel",),
            vmem_limit_bytes=32 * 1024 * 1024),
        cost_estimate=pl.CostEstimate(
            flops=flops, transcendentals=0, bytes_accessed=bytes_accessed),
    )(x, w1, b1, w2, b2, w3t, b3)

    # Lane-dense (1, Bp) slab -> (B, 1) to match the PyTorch module.
    return out[0, :B].reshape(B, 1)


def qnetwork_reference(state, action, params):
    """Pure-JAX reference with the kernel's exact numerics."""
    w1, b1, w2, b2, w3t, b3 = params
    ew = _elementwise_dtype()
    x = jnp.concatenate([state, action], axis=-1)
    x = jnp.pad(x, ((0, 0), (0, K_PAD - x.shape[-1]))).astype(jnp.bfloat16)
    h1 = jnp.dot(x, w1, preferred_element_type=jnp.float32)
    h1 = jnp.maximum(h1.astype(ew) + b1.astype(ew), 0.0).astype(jnp.bfloat16)
    h2 = jnp.dot(h1, w2, preferred_element_type=jnp.float32)
    h2 = jnp.maximum(h2.astype(ew) + b2.astype(ew), 0.0).astype(jnp.bfloat16)
    q = jnp.dot(h2, w3t.T, preferred_element_type=jnp.float32)
    return q + b3


def init_params(key):
    """nn.Linear-style U(-1/sqrt(fan_in)) init, stored in kernel layout:
    fc1's weight zero-padded to (K_PAD, H) bf16 (merged concat), fc3's weight
    transposed to (1, H) bf16; biases in f32."""
    def linear(key, fan_in, fan_out):
        kw, kb = jax.random.split(key)
        bound = 1.0 / jnp.sqrt(fan_in)
        w = jax.random.uniform(kw, (fan_in, fan_out), jnp.float32, -bound, bound)
        b = jax.random.uniform(kb, (1, fan_out), jnp.float32, -bound, bound)
        return w, b

    k1, k2, k3 = jax.random.split(key, 3)
    w1, b1 = linear(k1, STATE_DIM + ACTION_DIM, HIDDEN_DIM)
    w2, b2 = linear(k2, HIDDEN_DIM, HIDDEN_DIM)
    w3, b3 = linear(k3, HIDDEN_DIM, 1)

    # Zero-padded merged fc1 weight: padded K rows contribute nothing.
    w1p = jnp.zeros((K_PAD, HIDDEN_DIM), jnp.float32)
    w1p = w1p.at[:STATE_DIM + ACTION_DIM].set(w1)

    return (w1p.astype(jnp.bfloat16), b1,
            w2.astype(jnp.bfloat16), b2,
            w3.T.astype(jnp.bfloat16), b3)


if __name__ == "__main__":
    key = jax.random.PRNGKey(0)
    kp, ks, ka = jax.random.split(key, 3)

    params = init_params(kp)

    batch = 8
    state = jax.random.normal(ks, (batch, STATE_DIM), jnp.float32)
    action = jax.random.normal(ka, (batch, ACTION_DIM), jnp.float32)

    q = qnetwork_forward(state, action, params)
    q = jax.block_until_ready(q)
    assert q.shape == (batch, 1)

    ref = qnetwork_reference(state, action, params)
    assert jnp.allclose(q, ref, atol=1e-3, rtol=1e-3), \
        float(jnp.max(jnp.abs(q - ref)))

    print("KERNEL_OK")
</pallas_src>

<mosaic_0001>
module attributes {stable_mosaic.version = 11 : i64} {
  func.func @qnet_kernel(%arg0: i32, %arg1: memref<128x8xbf16, #tpu.memory_space<vmem>>, %arg2: memref<8x256xbf16, #tpu.memory_space<vmem>>, %arg3: memref<1x256xf32, #tpu.memory_space<vmem>>, %arg4: memref<256x256xbf16, #tpu.memory_space<vmem>>, %arg5: memref<1x256xf32, #tpu.memory_space<vmem>>, %arg6: memref<1x256xbf16, #tpu.memory_space<vmem>>, %arg7: memref<1x1xf32, #tpu.memory_space<vmem>>, %arg8: memref<1x128xf32, #tpu.memory_space<vmem>>) attributes {dimension_semantics = [#tpu.dimension_semantics<parallel>], iteration_bounds = array<i64: 1>, scalar_prefetch = 0 : i64, scratch_operands = 0 : i64, tpu.core_type = #tpu.core_type<tc>, window_params = [{transform_indices = @transform_0, window_bounds = array<i64: 128, 8>}, {pipeline_mode = #tpu.pipeline_mode<synchronous>, transform_indices = @transform_1, window_bounds = array<i64: 8, 256>}, {pipeline_mode = #tpu.pipeline_mode<synchronous>, transform_indices = @transform_2, window_bounds = array<i64: 1, 256>}, {pipeline_mode = #tpu.pipeline_mode<synchronous>, transform_indices = @transform_3, window_bounds = array<i64: 256, 256>}, {pipeline_mode = #tpu.pipeline_mode<synchronous>, transform_indices = @transform_4, window_bounds = array<i64: 1, 256>}, {pipeline_mode = #tpu.pipeline_mode<synchronous>, transform_indices = @transform_5, window_bounds = array<i64: 1, 256>}, {pipeline_mode = #tpu.pipeline_mode<synchronous>, transform_indices = @transform_6, window_bounds = array<i64: 1, 1>}, {transform_indices = @transform_7, window_bounds = array<i64: 1, 128>}]} {
    %c0 = arith.constant 0 : index
    %c0_0 = arith.constant 0 : index
    %0 = vector.load %arg1[%c0, %c0_0] : memref<128x8xbf16, #tpu.memory_space<vmem>>, vector<128x8xbf16>
    %c0_1 = arith.constant 0 : index
    %c0_2 = arith.constant 0 : index
    %1 = vector.load %arg2[%c0_1, %c0_2] : memref<8x256xbf16, #tpu.memory_space<vmem>>, vector<8x256xbf16>
    %cst = arith.constant dense<0.000000e+00> : vector<128x256xf32>
    %2 = tpu.matmul %0, %1, %cst {dimension_numbers = #tpu.dot_dimension_numbers<[1], [0], [0], [1], [0, 0, 1, 1], [], []>} : vector<128x8xbf16>, vector<8x256xbf16>, vector<128x256xf32> -> vector<128x256xf32>
    %c0_3 = arith.constant 0 : index
    %c0_4 = arith.constant 0 : index
    %3 = vector.load %arg3[%c0_3, %c0_4] : memref<1x256xf32, #tpu.memory_space<vmem>>, vector<1x256xf32>
    %4 = vector.broadcast %3 : vector<1x256xf32> to vector<128x256xf32>
    %5 = arith.addf %2, %4 : vector<128x256xf32>
    %cst_5 = arith.constant 0.000000e+00 : f32
    %6 = vector.broadcast %cst_5 : f32 to vector<128x256xf32>
    %7 = arith.maximumf %5, %6 : vector<128x256xf32>
    %8 = arith.truncf %7 : vector<128x256xf32> to vector<128x256xbf16>
    %c0_6 = arith.constant 0 : index
    %c0_7 = arith.constant 0 : index
    %9 = vector.load %arg4[%c0_6, %c0_7] : memref<256x256xbf16, #tpu.memory_space<vmem>>, vector<256x256xbf16>
    %cst_8 = arith.constant dense<0.000000e+00> : vector<128x256xf32>
    %10 = tpu.matmul %8, %9, %cst_8 {dimension_numbers = #tpu.dot_dimension_numbers<[1], [0], [0], [1], [0, 0, 1, 1], [], []>} : vector<128x256xbf16>, vector<256x256xbf16>, vector<128x256xf32> -> vector<128x256xf32>
    %c0_9 = arith.constant 0 : index
    %c0_10 = arith.constant 0 : index
    %11 = vector.load %arg5[%c0_9, %c0_10] : memref<1x256xf32, #tpu.memory_space<vmem>>, vector<1x256xf32>
    %12 = vector.broadcast %11 : vector<1x256xf32> to vector<128x256xf32>
    %13 = arith.addf %10, %12 : vector<128x256xf32>
    %cst_11 = arith.constant 0.000000e+00 : f32
    %14 = vector.broadcast %cst_11 : f32 to vector<128x256xf32>
    %15 = arith.maximumf %13, %14 : vector<128x256xf32>
    %16 = arith.truncf %15 : vector<128x256xf32> to vector<128x256xbf16>
    %c0_12 = arith.constant 0 : index
    %c0_13 = arith.constant 0 : index
    %17 = vector.load %arg6[%c0_12, %c0_13] : memref<1x256xbf16, #tpu.memory_space<vmem>>, vector<1x256xbf16>
    %cst_14 = arith.constant dense<0.000000e+00> : vector<1x128xf32>
    %18 = tpu.matmul %17, %16, %cst_14 {dimension_numbers = #tpu.dot_dimension_numbers<[1], [1], [0], [0], [0, 0, 1, 0], [], []>} : vector<1x256xbf16>, vector<128x256xbf16>, vector<1x128xf32> -> vector<1x128xf32>
    %c0_15 = arith.constant 0 : index
    %c0_16 = arith.constant 0 : index
    %19 = vector.load %arg7[%c0_15, %c0_16] : memref<1x1xf32, #tpu.memory_space<vmem>>, vector<1x1xf32>
    %20 = vector.broadcast %19 : vector<1x1xf32> to vector<1x128xf32>
    %21 = arith.addf %18, %20 : vector<1x128xf32>
    %c0_17 = arith.constant 0 : index
    %c0_18 = arith.constant 0 : index
    %22 = vector.load %arg8[%c0_17, %c0_18] : memref<1x128xf32, #tpu.memory_space<vmem>>, vector<1x128xf32>
    tpu.vector_store %arg8[%c0_17, %c0_18], %21 {strides = array<i32>} : memref<1x128xf32, #tpu.memory_space<vmem>>, vector<1x128xf32>,
    return
  }
  func.func @transform_0(%arg0: i32) -> (i32, i32) {
    %c0_i32 = arith.constant 0 : i32
    %c0_i32_0 = arith.constant 0 : i32
    return %arg0, %c0_i32 : i32, i32
  }
  func.func @transform_1(%arg0: i32) -> (i32, i32) {
    %c0_i32 = arith.constant 0 : i32
    %c0_i32_0 = arith.constant 0 : i32
    %c0_i32_1 = arith.constant 0 : i32
    return %c0_i32, %c0_i32_0 : i32, i32
  }
  func.func @transform_2(%arg0: i32) -> (i32, i32) {
    %c0_i32 = arith.constant 0 : i32
    %c0_i32_0 = arith.constant 0 : i32
    %c0_i32_1 = arith.constant 0 : i32
    return %c0_i32, %c0_i32_0 : i32, i32
  }
  func.func @transform_3(%arg0: i32) -> (i32, i32) {
    %c0_i32 = arith.constant 0 : i32
    %c0_i32_0 = arith.constant 0 : i32
    %c0_i32_1 = arith.constant 0 : i32
    return %c0_i32, %c0_i32_0 : i32, i32
  }
  func.func @transform_4(%arg0: i32) -> (i32, i32) {
    %c0_i32 = arith.constant 0 : i32
    %c0_i32_0 = arith.constant 0 : i32
    %c0_i32_1 = arith.constant 0 : i32
    return %c0_i32, %c0_i32_0 : i32, i32
  }
  func.func @transform_5(%arg0: i32) -> (i32, i32) {
    %c0_i32 = arith.constant 0 : i32
    %c0_i32_0 = arith.constant 0 : i32
    %c0_i32_1 = arith.constant 0 : i32
    return %c0_i32, %c0_i32_0 : i32, i32
  }
  func.func @transform_6(%arg0: i32) -> (i32, i32) {
    %c0_i32 = arith.constant 0 : i32
    %c0_i32_0 = arith.constant 0 : i32
    %c0_i32_1 = arith.constant 0 : i32
    return %c0_i32, %c0_i32_0 : i32, i32
  }
  func.func @transform_7(%arg0: i32) -> (i32, i32) {
    %c0_i32 = arith.constant 0 : i32
    %c0_i32_0 = arith.constant 0 : i32
    return %c0_i32, %arg0 : i32, i32
  }
}

</mosaic_0001>

<bundles_post_ra>
// kernel: tpu_custom_call.1
= control target key start
LH: loop header
LB: loop body
LE: loop exit
PB: predicated region body
PF: predicated region fallthrough
CT: control target
= control target key end

     0   :  { %s1157_s0 = inlined_call_operand.vmem [shape: bf16[128,8], index: 0, kind: input, shape index: {}]   ;;  %s1158_s1 = inlined_call_operand.vmem [shape: bf16[8,256], index: 1, kind: input, shape index: {}]   ;;  %s1159_s2 = inlined_call_operand.vmem [shape: f32[1,256], index: 2, kind: input, shape index: {}]   ;;  %s1160_s3 = inlined_call_operand.hbm [shape: bf16[256,256], index: 3, kind: input, shape index: {}]   ;;  %s1161_s4 = inlined_call_operand.vmem [shape: f32[1,256], index: 4, kind: input, shape index: {}]   ;;  %s1162_s5 = inlined_call_operand.vmem [shape: bf16[1,256], index: 5, kind: input, shape index: {}]   ;;  %s1163_s6 = inlined_call_operand.<no memory space> [shape: f32[1,1], index: 6, kind: input, shape index: {}]   ;;  %s1164_s7 = inlined_call_operand.hbm [shape: f32[1,128], index: 7, kind: output, shape index: {}]  }
   0x1   :  { %v12_v0 = vstv %s1163_s6 }
   0x2   :  { %13 = vst [vmem:[#allocation2] sm:$0x1] %v12_v0 }
   0x3   :  { %14 = vsyncpa [#allocation4], 0 }
   0x4   :  { %15 = vsyncpa [#allocation5], 0  ;;  %s933_s26 = smov [#allocation3]   ;;  %s885_s30 = scalar_lea.hbm %s1160_s3, 4096 }
   0x5   :  { %s27_s27 = sshll.u32 %s933_s26, 4  ;;  %p886_p0 = scmp.ne.s32.totalorder %s1160_s3, %s885_s30  ;;  %s28_s27 = int_to_ptr.vmem [resolvable:$true] %s27_s27 }
   0x6   :  { %p889_p1 = scmp.lt.u32.totalorder %s885_s30, %s1160_s3 }
   0x8   :  { %p891_p2 = pnand %p889_p1, %p886_p0 }
   0xa   :  { %894 = shalt.err (!%p891_p2)
}
   0xb   :  { %s895_s6 = scalar_lea.vmem %s28_s27, 4096  ;;  %p900_p4 = scmp.lt.s32.totalorder %s28_s27, %s28_s27 }
   0xc   :  { %p896_p3 = scmp.ne.s32.totalorder %s28_s27, %s895_s6  ;;  %p901_p5 = scmp.lt.s32.totalorder %s895_s6, %s895_s6 }
   0xe   :  { %p902_p6 = por %p901_p5, %p900_p4 }
  0x10   :  { %p903_p7 = pnand %p902_p6, %p896_p3 }
  0x12   :  { %906 = shalt.err (!%p903_p7)
}
  0x13   :  { %s934_s12 = smov 128   ;;  %s935_s13 = smov 8  }
  0x14   :  { %33 = dma.hbm_to_vmem [thread:$0]  %s1160_s3, 4096, %s28_s27, [#allocation4], %s934_s12, %s934_s12, %s935_s13  }
  0x15   :  { %929 = dma.done.wait [#allocation4], 4096  }
  0x16   :  { %930 = vsyncadd [#allocation4], 4294963200  ;;  %v936_v1 = vmov 0   ;;  %v60_v2 = vld [vmem:[%s1158_s1] sm:$0xff]  ;;  %vm143_vm0 = vcmask 1043456   ;;  %vm118_vm1 = vcmask 64512   ;;  %v63_v46 = vlaneseq }
  0x17   :  { %182 = vmatprep.mubr.bf16.mxu0 %v936_v1  ;;  %826 = vset.pattern.permute.xlu0 %v936_v1  ;;  %v777_v3 = vcombine.high %v60_v2, %v60_v2  ;;  %v776_v4 = vcombine.low %v60_v2, %v60_v2  ;;  %v829_v6 = vld [vmem:[%s1157_s0] sm:$0xff]   ;;  %v830_v10 = vld [vmem:[%s1157_s0 + $0x8] sm:$0xff]   ;;  %v842_v11 = vld [vmem:[#allocation3 + $0x10] ss:$8 sps:$4 sm:$0xff]  }
  0x18   :  { %v837_v7 = vld [vmem:[#allocation3 + $0x4] ss:$8 sps:$4 sm:$0xff]   ;;  %v839_v8 = vld [vmem:[#allocation3] ss:$8 sps:$4 sm:$0xff]   ;;  %v840_v9 = vld [vmem:[#allocation3 + $0x14] ss:$8 sps:$4 sm:$0xff]  }
  0x19   :  { %778 = vmatprep.subr.msk.bf16.mxu0 %vm143_vm0, %v777_v3  ;;  %v145_v5 = vsel %vm143_vm0, %v776_v4, 0  ;;  %515 = vmatprep.subr.bf16.mxu1 %v837_v7  ;;  %v843_v12 = vld [vmem:[#allocation3 + $0x24] ss:$8 sps:$4 sm:$0xff]   ;;  %v845_v13 = vld [vmem:[#allocation3 + $0x20] ss:$8 sps:$4 sm:$0xff]   ;;  %v832_v20 = vld [vmem:[%s1157_s0 + $0x18] sm:$0xff]  }
  0x1a   :  { %151 = vmatpush1.bf16.msra.mxu0 %v145_v5  ;;  %516 = vmatpush1.bf16.msra.mxu1 %v839_v8  ;;  %v846_v14 = vld [vmem:[#allocation3 + $0x34] ss:$8 sps:$4 sm:$0xff]   ;;  %v848_v16 = vld [vmem:[#allocation3 + $0x30] ss:$8 sps:$4 sm:$0xff]   ;;  %v849_v17 = vld [vmem:[#allocation3 + $0x44] ss:$8 sps:$4 sm:$0xff]  }
  0x1b   :  { %517 = vmatprep.subr.bf16.mxu1 %v840_v9  ;;  %v831_v15 = vld [vmem:[%s1157_s0 + $0x10] sm:$0xff]   ;;  %v851_v18 = vld [vmem:[#allocation3 + $0x40] ss:$8 sps:$4 sm:$0xff]   ;;  %v836_v40 = vld [vmem:[%s1157_s0 + $0x38] sm:$0xff]   ;;  %v1038_v47 = vshrl.u32 %v63_v46, 7 }
  0x1c   :  { %v852_v19 = vld [vmem:[#allocation3 + $0x54] ss:$8 sps:$4 sm:$0xff]   ;;  %v854_v21 = vld [vmem:[#allocation3 + $0x50] ss:$8 sps:$4 sm:$0xff]   ;;  %v855_v22 = vld [vmem:[#allocation3 + $0x64] ss:$8 sps:$4 sm:$0xff]  }
  0x1d   :  { %779 = vmatmul.mubr.msk.bf16.vlgmr.msra.gmra.mrb[0].mxu0 %vm118_vm1, %v829_v6  ;;  %v857_v23 = vld [vmem:[#allocation3 + $0x60] ss:$8 sps:$4 sm:$0xff]   ;;  %v858_v24 = vld [vmem:[#allocation3 + $0x74] ss:$8 sps:$4 sm:$0xff]   ;;  %v860_v26 = vld [vmem:[#allocation3 + $0x70] ss:$8 sps:$4 sm:$0xff]  }
  0x1e   :  { %192 = vmatprep.mubr.bf16.mxu0 %v936_v1  ;;  %518 = vmatpush1.bf16.msra.mxu1 %v842_v11  ;;  %v833_v25 = vld [vmem:[%s1157_s0 + $0x20] sm:$0xff]   ;;  %v834_v30 = vld [vmem:[%s1157_s0 + $0x28] sm:$0xff]   ;;  %v866_v31 = vld [vmem:[#allocation3 + $0x90] ss:$8 sps:$4 sm:$0xff]   ;;  %v1041_v48 = vsub.s32 0, %v1038_v47  ;;  %v69_v50 = vsub.s32 1, %v1038_v47 }
  0x1f   :  { %519 = vmatprep.subr.bf16.mxu1 %v843_v12  ;;  %v861_v27 = vld [vmem:[#allocation3 + $0x84] ss:$8 sps:$4 sm:$0xff]   ;;  %v863_v28 = vld [vmem:[#allocation3 + $0x80] ss:$8 sps:$4 sm:$0xff]   ;;  %v864_v29 = vld [vmem:[#allocation3 + $0x94] ss:$8 sps:$4 sm:$0xff]  }
  0x20   :  { %v867_v32 = vld [vmem:[#allocation3 + $0xa4] ss:$8 sps:$4 sm:$0xff]   ;;  %v869_v33 = vld [vmem:[#allocation3 + $0xa0] ss:$8 sps:$4 sm:$0xff]   ;;  %v870_v34 = vld [vmem:[#allocation3 + $0xb4] ss:$8 sps:$4 sm:$0xff]  }
  0x21   :  { %v835_v35 = vld [vmem:[%s1157_s0 + $0x30] sm:$0xff]   ;;  %v875_v38 = vld [vmem:[#allocation3 + $0xc0] ss:$8 sps:$4 sm:$0xff]  }
  0x22   :  { %520 = vmatpush1.bf16.msra.mxu1 %v845_v13  ;;  %v872_v36 = vld [vmem:[#allocation3 + $0xb0] ss:$8 sps:$4 sm:$0xff]   ;;  %v873_v37 = vld [vmem:[#allocation3 + $0xc4] ss:$8 sps:$4 sm:$0xff]   ;;  %v876_v39 = vld [vmem:[#allocation3 + $0xd4] ss:$8 sps:$4 sm:$0xff]  }
  0x23   :  { %521 = vmatprep.subr.bf16.mxu1 %v846_v14  ;;  %v878_v41 = vld [vmem:[#allocation3 + $0xd0] ss:$8 sps:$4 sm:$0xff]   ;;  %v879_v42 = vld [vmem:[#allocation3 + $0xe4] ss:$8 sps:$4 sm:$0xff]   ;;  %v881_v43 = vld [vmem:[#allocation3 + $0xe0] ss:$8 sps:$4 sm:$0xff]  }
  0x24   :  { %v882_v44 = vld [vmem:[#allocation3 + $0xf4] ss:$8 sps:$4 sm:$0xff]   ;;  %v884_v45 = vld [vmem:[#allocation3 + $0xf0] ss:$8 sps:$4 sm:$0xff]  }
  0x25   :  { %780 = vmatmul.mubr.msk.bf16.gmra.mrb[4].mxu0 %vm118_vm1, %v830_v10  ;;  %v61_v49 = vld [vmem:[%s1159_s2] sm:$0x3] }
  0x26   :  { %202 = vmatprep.mubr.bf16.mxu0 %v936_v1  ;;  %522 = vmatpush1.bf16.msra.mxu1 %v848_v16  ;;  %v1048_v51 = vrot.slane %v61_v49, %v1041_v48  ;;  %v1052_v52 = vrot.slane %v61_v49, %v69_v50 }
  0x27   :  { %523 = vmatprep.subr.bf16.mxu1 %v849_v17 }
  0x2a   :  { %524 = vmatpush1.bf16.msra.mxu1 %v851_v18 }
  0x2b   :  { %525 = vmatprep.subr.bf16.mxu1 %v852_v19 }
  0x2d   :  { %781 = vmatmul.mubr.msk.bf16.gmra.mrb[8].mxu0 %vm118_vm1, %v831_v15 }
  0x2e   :  { %212 = vmatprep.mubr.bf16.mxu0 %v936_v1  ;;  %526 = vmatpush1.bf16.msra.mxu1 %v854_v21 }
  0x2f   :  { %527 = vmatprep.subr.bf16.mxu1 %v855_v22 }
  0x32   :  { %528 = vmatpush1.bf16.msra.mxu1 %v857_v23 }
  0x33   :  { %529 = vmatprep.subr.bf16.mxu1 %v858_v24 }
  0x35   :  { %782 = vmatmul.mubr.msk.bf16.gmra.mrb[12].mxu0 %vm118_vm1, %v832_v20 }
  0x36   :  { %222 = vmatprep.mubr.bf16.mxu0 %v936_v1  ;;  %530 = vmatpush1.bf16.msra.mxu1 %v860_v26 }
  0x37   :  { %531 = vmatprep.subr.bf16.mxu1 %v861_v27 }
  0x3a   :  { %532 = vmatpush1.bf16.msra.mxu1 %v863_v28 }
  0x3b   :  { %533 = vmatprep.subr.bf16.mxu1 %v864_v29 }
  0x3d   :  { %783 = vmatmul.mubr.msk.bf16.gmra.mrb[16].mxu0 %vm118_vm1, %v833_v25 }
  0x3e   :  { %232 = vmatprep.mubr.bf16.mxu0 %v936_v1  ;;  %534 = vmatpush1.bf16.msra.mxu1 %v866_v31 }
  0x3f   :  { %535 = vmatprep.subr.bf16.mxu1 %v867_v32 }
  0x42   :  { %536 = vmatpush1.bf16.msra.mxu1 %v869_v33 }
  0x43   :  { %537 = vmatprep.subr.bf16.mxu1 %v870_v34 }
  0x45   :  { %784 = vmatmul.mubr.msk.bf16.gmra.mrb[20].mxu0 %vm118_vm1, %v834_v30 }
  0x46   :  { %242 = vmatprep.mubr.bf16.mxu0 %v936_v1  ;;  %538 = vmatpush1.bf16.msra.mxu1 %v872_v36 }
  0x47   :  { %539 = vmatprep.subr.bf16.mxu1 %v873_v37 }
  0x4a   :  { %540 = vmatpush1.bf16.msra.mxu1 %v875_v38 }
  0x4b   :  { %541 = vmatprep.subr.bf16.mxu1 %v876_v39 }
  0x4d   :  { %785 = vmatmul.mubr.msk.bf16.gmra.mrb[24].mxu0 %vm118_vm1, %v835_v35 }
  0x4e   :  { %252 = vmatprep.mubr.bf16.mxu0 %v936_v1  ;;  %542 = vmatpush1.bf16.msra.mxu1 %v878_v41 }
  0x4f   :  { %543 = vmatprep.subr.bf16.mxu1 %v879_v42 }
  0x52   :  { %544 = vmatpush1.bf16.msra.mxu1 %v881_v43 }
  0x53   :  { %545 = vmatprep.subr.bf16.mxu1 %v882_v44 }
  0x55   :  { %786 = vmatmul.mubr.msk.bf16.gmra.mrb[28].mxu0 %vm118_vm1, %v836_v40 }
  0x56   :  { %546 = vmatpush1.bf16.msra.mxu1 %v884_v45 }
  0xf0   :  { %v184_v53 = vpop.f32.mrb[0].mxu0 }
  0xf1   :  { %v185_v54 = vadd.f32 %v184_v53, %v1048_v51  ;;  %v186_v55 = vpop.f32.mrb[1].mxu0 }
  0xf2   :  { %v187_v56 = vadd.f32 %v186_v55, %v1052_v52  ;;  %v188_v57 = vpop.f32.mrb[2].mxu0 }
  0xf3   :  { %v189_v58 = vadd.f32 %v188_v57, %v1048_v51  ;;  %v190_v59 = vpop.f32.mrb[3].mxu0  ;;  %v263_v61 = vmax.f32 %v185_v54, 0.0 }
  0xf4   :  { %v191_v60 = vadd.f32 %v190_v59, %v1052_v52  ;;  %v264_v63 = vmax.f32 %v187_v56, 0.0 }
  0xf5   :  { %v265_v62 = vmax.f32 %v189_v58, 0.0 }
  0xf6   :  { %v266_v0 = vmax.f32 %v191_v60, 0.0 }
  0xf7   :  { %v295_v1 = vpack.c.bf16 %v265_v62, %v263_v61 }
  0xf8   :  { %v194_v2 = vpop.f32.mrb[4].mxu0  ;;  %v296_v3 = vpack.c.bf16 %v266_v0, %v264_v63 }
  0xf9   :  { %v195_v4 = vadd.f32 %v194_v2, %v1048_v51  ;;  %v196_v5 = vpop.f32.mrb[5].mxu0 }
  0xfa   :  { %v197_v6 = vadd.f32 %v196_v5, %v1052_v52  ;;  %v198_v7 = vpop.f32.mrb[6].mxu0  ;;  %547 = vmatprep.mubr.bf16.mxu1 %v296_v3 }
  0xfb   :  { %v199_v8 = vadd.f32 %v198_v7, %v1048_v51  ;;  %v200_v9 = vpop.f32.mrb[7].mxu0  ;;  %548 = vmatmul.mubr.bf16.vlgmr.msra.gmra.mrb[0].mxu1 %v295_v1  ;;  %v267_v11 = vmax.f32 %v195_v4, 0.0 }
  0xfc   :  { %v201_v10 = vadd.f32 %v200_v9, %v1052_v52  ;;  %v268_v13 = vmax.f32 %v197_v6, 0.0 }
  0xfd   :  { %v269_v12 = vmax.f32 %v199_v8, 0.0 }
  0xfe   :  { %v270_v14 = vmax.f32 %v201_v10, 0.0 }
  0xff   :  { %v297_v15 = vpack.c.bf16 %v269_v12, %v267_v11 }
 0x100   :  { %v298_v16 = vpack.c.bf16 %v270_v14, %v268_v13  ;;  %v204_v17 = vpop.f32.mrb[8].mxu0 }
 0x101   :  { %v205_v18 = vadd.f32 %v204_v17, %v1048_v51  ;;  %v206_v19 = vpop.f32.mrb[9].mxu0 }
 0x102   :  { %v207_v20 = vadd.f32 %v206_v19, %v1052_v52  ;;  %v208_v21 = vpop.f32.mrb[10].mxu0  ;;  %557 = vmatprep.mubr.bf16.mxu1 %v298_v16 }
 0x103   :  { %v209_v22 = vadd.f32 %v208_v21, %v1048_v51  ;;  %v210_v23 = vpop.f32.mrb[11].mxu0  ;;  %558 = vmatmul.mubr.bf16.gmra.mrb[4].mxu1 %v297_v15  ;;  %v271_v25 = vmax.f32 %v205_v18, 0.0 }
 0x104   :  { %v211_v24 = vadd.f32 %v210_v23, %v1052_v52  ;;  %v272_v27 = vmax.f32 %v207_v20, 0.0 }
 0x105   :  { %v273_v26 = vmax.f32 %v209_v22, 0.0 }
 0x106   :  { %v274_v28 = vmax.f32 %v211_v24, 0.0 }
 0x107   :  { %v299_v29 = vpack.c.bf16 %v273_v26, %v271_v25 }
 0x108   :  { %v300_v30 = vpack.c.bf16 %v274_v28, %v272_v27  ;;  %v214_v31 = vpop.f32.mrb[12].mxu0 }
 0x109   :  { %v215_v32 = vadd.f32 %v214_v31, %v1048_v51  ;;  %v216_v33 = vpop.f32.mrb[13].mxu0 }
 0x10a   :  { %v217_v34 = vadd.f32 %v216_v33, %v1052_v52  ;;  %v218_v35 = vpop.f32.mrb[14].mxu0  ;;  %567 = vmatprep.mubr.bf16.mxu1 %v300_v30 }
 0x10b   :  { %v219_v36 = vadd.f32 %v218_v35, %v1048_v51  ;;  %v220_v37 = vpop.f32.mrb[15].mxu0  ;;  %568 = vmatmul.mubr.bf16.gmra.mrb[8].mxu1 %v299_v29  ;;  %v275_v39 = vmax.f32 %v215_v32, 0.0 }
 0x10c   :  { %v221_v38 = vadd.f32 %v220_v37, %v1052_v52  ;;  %v276_v41 = vmax.f32 %v217_v34, 0.0 }
 0x10d   :  { %v277_v40 = vmax.f32 %v219_v36, 0.0 }
 0x10e   :  { %v278_v42 = vmax.f32 %v221_v38, 0.0 }
 0x10f   :  { %v301_v43 = vpack.c.bf16 %v277_v40, %v275_v39 }
 0x110   :  { %v302_v44 = vpack.c.bf16 %v278_v42, %v276_v41  ;;  %v224_v45 = vpop.f32.mrb[16].mxu0  ;;  %v937_v42 = vmov 1966171168  }
 0x111   :  { %v225_v46 = vadd.f32 %v224_v45, %v1048_v51  ;;  %v226_v49 = vpop.f32.mrb[17].mxu0 }
 0x112   :  { %v227_v53 = vadd.f32 %v226_v49, %v1052_v52  ;;  %v228_v54 = vpop.f32.mrb[18].mxu0  ;;  %577 = vmatprep.mubr.bf16.mxu1 %v302_v44  ;;  %v1089_v44 = vld.sshfl [vmem:[%s1162_s5] sm:$0x11 pattern:$0x75316420] }
 0x113   :  { %v229_v55 = vadd.f32 %v228_v54, %v1048_v51  ;;  %v230_v56 = vpop.f32.mrb[19].mxu0  ;;  %578 = vmatmul.mubr.bf16.gmra.mrb[12].mxu1 %v301_v43  ;;  %v279_v58 = vmax.f32 %v225_v46, 0.0  ;;  %v697_v43 = vunpack.c.l.s4 %v937_v42  ;;  %v695_v45 = vcombine.high %v1089_v44, %v1089_v44  ;;  %v343_v54 = vld [vmem:[%s1161_s4] sm:$0x3]  ;;  %s938_s4 = smov [#allocation6]  }
 0x114   :  { %v231_v57 = vadd.f32 %v230_v56, %v1052_v52  ;;  %v280_v60 = vmax.f32 %v227_v53, 0.0  ;;  %v677_v53 = vld [vmem:[#allocation2] sm:$0x1]  ;;  %v1107_v56 = vrot.slane %v343_v54, %v69_v50  ;;  %s759_s5 = sshll.u32 %s938_s4, 4  ;;  %s760_s5 = int_to_ptr.vmem [resolvable:$true] %s759_s5 }
 0x115   :  { %v281_v59 = vmax.f32 %v229_v55, 0.0  ;;  %680 = vperm.xlu0 %826, %v677_v53   ;;  %v1103_v55 = vrot.slane %v343_v54, %v1041_v48  ;;  %s907_s12 = scalar_lea.vmem %s760_s5, 16  ;;  %s911_s13 = scalar_lea.vmem %s760_s5, 32 }
 0x116   :  { %v282_v61 = vmax.f32 %v231_v57, 0.0  ;;  %p908_p8 = scmp.ne.s32.totalorder %s760_s5, %s907_s12  ;;  %p912_p9 = scmp.lt.s32.totalorder %s760_s5, %s760_s5 }
 0x117   :  { %v303_v62 = vpack.c.bf16 %v281_v59, %v279_v58  ;;  %p913_p10 = scmp.lt.s32.totalorder %s911_s13, %s907_s12 }
 0x118   :  { %v304_v63 = vpack.c.bf16 %v282_v61, %v280_v60  ;;  %v234_v0 = vpop.f32.mrb[20].mxu0 }
 0x119   :  { %v235_v1 = vadd.f32 %v234_v0, %v1048_v51  ;;  %v236_v2 = vpop.f32.mrb[21].mxu0  ;;  %p914_p11 = por %p913_p10, %p912_p9 }
 0x11a   :  { %v237_v3 = vadd.f32 %v236_v2, %v1052_v52  ;;  %v238_v4 = vpop.f32.mrb[22].mxu0  ;;  %587 = vmatprep.mubr.bf16.mxu1 %v304_v63 }
 0x11b   :  { %v239_v5 = vadd.f32 %v238_v4, %v1048_v51  ;;  %v240_v6 = vpop.f32.mrb[23].mxu0  ;;  %588 = vmatmul.mubr.bf16.gmra.mrb[16].mxu1 %v303_v62  ;;  %v283_v8 = vmax.f32 %v235_v1, 0.0  ;;  %p915_p12 = pnand %p914_p11, %p908_p8 }
 0x11c   :  { %v241_v7 = vadd.f32 %v240_v6, %v1052_v52  ;;  %v284_v10 = vmax.f32 %v237_v3, 0.0 }
 0x11d   :  { %v285_v9 = vmax.f32 %v239_v5, 0.0 }
 0x11e   :  { %v286_v11 = vmax.f32 %v241_v7, 0.0 }
 0x11f   :  { %v305_v12 = vpack.c.bf16 %v285_v9, %v283_v8 }
 0x120   :  { %v306_v13 = vpack.c.bf16 %v286_v11, %v284_v10  ;;  %v244_v14 = vpop.f32.mrb[24].mxu0 }
 0x121   :  { %v245_v15 = vadd.f32 %v244_v14, %v1048_v51  ;;  %v246_v16 = vpop.f32.mrb[25].mxu0 }
 0x122   :  { %v247_v17 = vadd.f32 %v246_v16, %v1052_v52  ;;  %v248_v18 = vpop.f32.mrb[26].mxu0  ;;  %597 = vmatprep.mubr.bf16.mxu1 %v306_v13 }
 0x123   :  { %v249_v19 = vadd.f32 %v248_v18, %v1048_v51  ;;  %v250_v20 = vpop.f32.mrb[27].mxu0  ;;  %598 = vmatmul.mubr.bf16.gmra.mrb[20].mxu1 %v305_v12  ;;  %v287_v22 = vmax.f32 %v245_v15, 0.0 }
 0x124   :  { %v251_v21 = vadd.f32 %v250_v20, %v1052_v52  ;;  %v288_v24 = vmax.f32 %v247_v17, 0.0 }
 0x125   :  { %v289_v23 = vmax.f32 %v249_v19, 0.0 }
 0x126   :  { %v290_v25 = vmax.f32 %v251_v21, 0.0 }
 0x127   :  { %v307_v26 = vpack.c.bf16 %v289_v23, %v287_v22 }
 0x128   :  { %v308_v27 = vpack.c.bf16 %v290_v25, %v288_v24  ;;  %v254_v28 = vpop.f32.mrb[28].mxu0 }
 0x129   :  { %v255_v29 = vadd.f32 %v254_v28, %v1048_v51  ;;  %v256_v30 = vpop.f32.mrb[29].mxu0 }
 0x12a   :  { %v257_v31 = vadd.f32 %v256_v30, %v1052_v52  ;;  %v258_v32 = vpop.f32.mrb[30].mxu0  ;;  %607 = vmatprep.mubr.bf16.mxu1 %v308_v27 }
 0x12b   :  { %v259_v33 = vadd.f32 %v258_v32, %v1048_v51  ;;  %v260_v34 = vpop.f32.mrb[31].mxu0  ;;  %608 = vmatmul.mubr.bf16.gmra.mrb[24].mxu1 %v307_v26  ;;  %v291_v36 = vmax.f32 %v255_v29, 0.0  ;;  %v698_v51 = vunpack.c.0.s8 %v697_v43 }
 0x12c   :  { %v261_v35 = vadd.f32 %v260_v34, %v1052_v52  ;;  %v292_v38 = vmax.f32 %v257_v31, 0.0 }
 0x12d   :  { %v293_v37 = vmax.f32 %v259_v33, 0.0  ;;  %v1094_v52 = vsub.s32 %v698_v51, %v1038_v47 }
 0x12e   :  { %v294_v39 = vmax.f32 %v261_v35, 0.0 }
 0x12f   :  { %v309_v40 = vpack.c.bf16 %v293_v37, %v291_v36  ;;  %v702_v46 = vrot.slane %v1089_v44, %v1094_v52  ;;  %v709_v49 = vrot.slane %v695_v45, %v1094_v52 }
 0x130   :  { %v310_v41 = vpack.c.bf16 %v294_v39, %v292_v38 }
 0x131   :  { %744 = vmatprep.mubr.bf16.mxu0 %v709_v49 }
 0x132   :  { %617 = vmatprep.mubr.bf16.mxu1 %v310_v41 }
 0x133   :  { %618 = vmatmul.mubr.bf16.gmra.mrb[28].mxu1 %v309_v40 }
 0x1ce   :  { %v549_v57 = vpop.f32.mrb[0].mxu1 }
 0x1cf   :  { %v550_v58 = vadd.f32 %v549_v57, %v1103_v55  ;;  %v551_v59 = vpop.f32.mrb[1].mxu1 }
 0x1d0   :  { %v552_v60 = vadd.f32 %v551_v59, %v1107_v56  ;;  %v553_v61 = vpop.f32.mrb[2].mxu1 }
 0x1d1   :  { %v554_v62 = vadd.f32 %v553_v61, %v1103_v55  ;;  %v555_v63 = vpop.f32.mrb[3].mxu1  ;;  %v628_v1 = vmax.f32 %v550_v58, 0.0 }
 0x1d2   :  { %v556_v0 = vadd.f32 %v555_v63, %v1107_v56  ;;  %v629_v3 = vmax.f32 %v552_v60, 0.0 }
 0x1d3   :  { %v630_v2 = vmax.f32 %v554_v62, 0.0 }
 0x1d4   :  { %v631_v4 = vmax.f32 %v556_v0, 0.0 }
 0x1d5   :  { %v660_v5 = vpack.c.bf16 %v630_v2, %v628_v1 }
 0x1d6   :  { %v661_v47 = vpack.c.bf16 %v631_v4, %v629_v3  ;;  %v559_v50 = vpop.f32.mrb[4].mxu1 }
 0x1d7   :  { %v560_v6 = vadd.f32 %v559_v50, %v1103_v55  ;;  %v561_v7 = vpop.f32.mrb[5].mxu1 }
 0x1d8   :  { %v562_v8 = vadd.f32 %v561_v7, %v1107_v56  ;;  %v563_v9 = vpop.f32.mrb[6].mxu1  ;;  %712 = vmatprep.subr.bf16.mxu0 %v661_v47 }
 0x1d9   :  { %v564_v10 = vadd.f32 %v563_v9, %v1103_v55  ;;  %v565_v11 = vpop.f32.mrb[7].mxu1  ;;  %713 = vmatpush1.bf16.xpose.msra.mxu0 %v660_v5  ;;  %v632_v13 = vmax.f32 %v560_v6, 0.0 }
 0x1da   :  { %v566_v12 = vadd.f32 %v565_v11, %v1107_v56  ;;  %v633_v15 = vmax.f32 %v562_v8, 0.0 }
 0x1db   :  { %v634_v14 = vmax.f32 %v564_v10, 0.0 }
 0x1dc   :  { %v635_v16 = vmax.f32 %v566_v12, 0.0 }
 0x1dd   :  { %v662_v17 = vpack.c.bf16 %v634_v14, %v632_v13 }
 0x1de   :  { %v663_v18 = vpack.c.bf16 %v635_v16, %v633_v15  ;;  %v569_v19 = vpop.f32.mrb[8].mxu1 }
 0x1df   :  { %v570_v20 = vadd.f32 %v569_v19, %v1103_v55  ;;  %v571_v21 = vpop.f32.mrb[9].mxu1 }
 0x1e0   :  { %v572_v22 = vadd.f32 %v571_v21, %v1107_v56  ;;  %v573_v23 = vpop.f32.mrb[10].mxu1  ;;  %714 = vmatprep.subr.bf16.mxu0 %v663_v18 }
 0x1e1   :  { %v574_v24 = vadd.f32 %v573_v23, %v1103_v55  ;;  %v575_v25 = vpop.f32.mrb[11].mxu1  ;;  %715 = vmatpush1.bf16.xpose.msra.mxu0 %v662_v17  ;;  %v636_v27 = vmax.f32 %v570_v20, 0.0 }
 0x1e2   :  { %v576_v26 = vadd.f32 %v575_v25, %v1107_v56  ;;  %v637_v29 = vmax.f32 %v572_v22, 0.0 }
 0x1e3   :  { %v638_v28 = vmax.f32 %v574_v24, 0.0 }
 0x1e4   :  { %v639_v30 = vmax.f32 %v576_v26, 0.0 }
 0x1e5   :  { %v664_v31 = vpack.c.bf16 %v638_v28, %v636_v27 }
 0x1e6   :  { %v665_v32 = vpack.c.bf16 %v639_v30, %v637_v29  ;;  %v579_v33 = vpop.f32.mrb[12].mxu1 }
 0x1e7   :  { %v580_v34 = vadd.f32 %v579_v33, %v1103_v55  ;;  %v581_v35 = vpop.f32.mrb[13].mxu1 }
 0x1e8   :  { %v582_v36 = vadd.f32 %v581_v35, %v1107_v56  ;;  %v583_v37 = vpop.f32.mrb[14].mxu1  ;;  %716 = vmatprep.subr.bf16.mxu0 %v665_v32 }
 0x1e9   :  { %v584_v38 = vadd.f32 %v583_v37, %v1103_v55  ;;  %v585_v39 = vpop.f32.mrb[15].mxu1  ;;  %717 = vmatpush1.bf16.xpose.msra.mxu0 %v664_v31  ;;  %v640_v41 = vmax.f32 %v580_v34, 0.0 }
 0x1ea   :  { %v586_v40 = vadd.f32 %v585_v39, %v1107_v56  ;;  %v641_v43 = vmax.f32 %v582_v36, 0.0 }
 0x1eb   :  { %v642_v42 = vmax.f32 %v584_v38, 0.0 }
 0x1ec   :  { %v643_v51 = vmax.f32 %v586_v40, 0.0 }
 0x1ed   :  { %v666_v45 = vpack.c.bf16 %v642_v42, %v640_v41 }
 0x1ee   :  { %v667_v49 = vpack.c.bf16 %v643_v51, %v641_v43  ;;  %v589_v53 = vpop.f32.mrb[16].mxu1 }
 0x1ef   :  { %v590_v54 = vadd.f32 %v589_v53, %v1103_v55  ;;  %v591_v57 = vpop.f32.mrb[17].mxu1 }
 0x1f0   :  { %v592_v58 = vadd.f32 %v591_v57, %v1107_v56  ;;  %v593_v59 = vpop.f32.mrb[18].mxu1  ;;  %718 = vmatprep.subr.bf16.mxu0 %v667_v49 }
 0x1f1   :  { %v594_v60 = vadd.f32 %v593_v59, %v1103_v55  ;;  %v595_v61 = vpop.f32.mrb[19].mxu1  ;;  %719 = vmatpush1.bf16.xpose.msra.mxu0 %v666_v45  ;;  %v644_v63 = vmax.f32 %v590_v54, 0.0  ;;  %v681_v45 = vpop.permute.xlu0 %680 }
 0x1f2   :  { %v596_v62 = vadd.f32 %v595_v61, %v1107_v56  ;;  %v645_v1 = vmax.f32 %v592_v58, 0.0  ;;  %v686_v49 = vrot.slane %v681_v45, %v1041_v48 }
 0x1f3   :  { %v646_v0 = vmax.f32 %v594_v60, 0.0 }
 0x1f4   :  { %v647_v2 = vmax.f32 %v596_v62, 0.0 }
 0x1f5   :  { %v668_v3 = vpack.c.bf16 %v646_v0, %v644_v63 }
 0x1f6   :  { %v669_v4 = vpack.c.bf16 %v647_v2, %v645_v1  ;;  %v599_v5 = vpop.f32.mrb[20].mxu1 }
 0x1f7   :  { %v600_v47 = vadd.f32 %v599_v5, %v1103_v55  ;;  %v601_v50 = vpop.f32.mrb[21].mxu1 }
 0x1f8   :  { %v602_v6 = vadd.f32 %v601_v50, %v1107_v56  ;;  %v603_v7 = vpop.f32.mrb[22].mxu1  ;;  %720 = vmatprep.subr.bf16.mxu0 %v669_v4 }
 0x1f9   :  { %v604_v8 = vadd.f32 %v603_v7, %v1103_v55  ;;  %v605_v9 = vpop.f32.mrb[23].mxu1  ;;  %721 = vmatpush1.bf16.xpose.msra.mxu0 %v668_v3  ;;  %v648_v11 = vmax.f32 %v600_v47, 0.0 }
 0x1fa   :  { %v606_v10 = vadd.f32 %v605_v9, %v1107_v56  ;;  %v649_v13 = vmax.f32 %v602_v6, 0.0 }
 0x1fb   :  { %v650_v12 = vmax.f32 %v604_v8, 0.0 }
 0x1fc   :  { %v651_v14 = vmax.f32 %v606_v10, 0.0 }
 0x1fd   :  { %v670_v15 = vpack.c.bf16 %v650_v12, %v648_v11 }
 0x1fe   :  { %v671_v16 = vpack.c.bf16 %v651_v14, %v649_v13  ;;  %v609_v17 = vpop.f32.mrb[24].mxu1 }
 0x1ff   :  { %v610_v18 = vadd.f32 %v609_v17, %v1103_v55  ;;  %v611_v19 = vpop.f32.mrb[25].mxu1 }
 0x200   :  { %v612_v20 = vadd.f32 %v611_v19, %v1107_v56  ;;  %v613_v21 = vpop.f32.mrb[26].mxu1  ;;  %722 = vmatprep.subr.bf16.mxu0 %v671_v16 }
 0x201   :  { %v614_v22 = vadd.f32 %v613_v21, %v1103_v55  ;;  %v615_v23 = vpop.f32.mrb[27].mxu1  ;;  %723 = vmatpush1.bf16.xpose.msra.mxu0 %v670_v15  ;;  %v652_v25 = vmax.f32 %v610_v18, 0.0 }
 0x202   :  { %v616_v24 = vadd.f32 %v615_v23, %v1107_v56  ;;  %v653_v27 = vmax.f32 %v612_v20, 0.0 }
 0x203   :  { %v654_v26 = vmax.f32 %v614_v22, 0.0 }
 0x204   :  { %v655_v28 = vmax.f32 %v616_v24, 0.0 }
 0x205   :  { %v672_v29 = vpack.c.bf16 %v654_v26, %v652_v25 }
 0x206   :  { %v673_v30 = vpack.c.bf16 %v655_v28, %v653_v27  ;;  %v619_v31 = vpop.f32.mrb[28].mxu1 }
 0x207   :  { %v620_v32 = vadd.f32 %v619_v31, %v1103_v55  ;;  %v621_v33 = vpop.f32.mrb[29].mxu1 }
 0x208   :  { %v622_v34 = vadd.f32 %v621_v33, %v1107_v56  ;;  %v623_v35 = vpop.f32.mrb[30].mxu1  ;;  %724 = vmatprep.subr.bf16.mxu0 %v673_v30 }
 0x209   :  { %v624_v36 = vadd.f32 %v623_v35, %v1103_v55  ;;  %v625_v37 = vpop.f32.mrb[31].mxu1  ;;  %725 = vmatpush1.bf16.xpose.msra.mxu0 %v672_v29  ;;  %v656_v39 = vmax.f32 %v620_v32, 0.0 }
 0x20a   :  { %v626_v38 = vadd.f32 %v625_v37, %v1107_v56  ;;  %v657_v41 = vmax.f32 %v622_v34, 0.0 }
 0x20b   :  { %v658_v40 = vmax.f32 %v624_v36, 0.0 }
 0x20c   :  { %v659_v42 = vmax.f32 %v626_v38, 0.0 }
 0x20d   :  { %v674_v43 = vpack.c.bf16 %v658_v40, %v656_v39 }
 0x20e   :  { %v675_v51 = vpack.c.bf16 %v659_v42, %v657_v41 }
 0x210   :  { %726 = vmatprep.subr.bf16.mxu0 %v675_v51 }
 0x211   :  { %727 = vmatpush1.bf16.xpose.msra.mxu0 %v674_v43 }
 0x218   :  { %745 = vmatmul.mubr.bf16.vlgmr.msra.gmra.mrb[32].mxu0 %v702_v46 }
 0x2eb   :  { %v746_v55 = vpop.f32.mrb[32].mxu0 }
 0x2ec   :  { %v747_v53 = vadd.f32 %v746_v55, %v686_v49  ;;  %v748_v56 = vpop.f32.mrb[33].mxu0 }
 0x2ed   :  { %v749_v54 = vpop.f32.mrb[34].mxu0 }
 0x2ee   :  { %752 = vst [vmem:[#allocation6] sm:$0x1] %v747_v53  ;;  %v750_v57 = vpop.f32.mrb[35].mxu0 }
 0x2ef   :  { %918 = shalt.err (!%p915_p12)
}
 0x2f0   :  { %s919_s16 = scalar_lea.hbm %s1164_s7, 16 }
 0x2f1   :  { %p920_p13 = scmp.ne.s32.totalorder %s1164_s7, %s919_s16  ;;  %p923_p0 = scmp.lt.u32.totalorder %s919_s16, %s1164_s7 }
 0x2f3   :  { %p925_p1 = pnand %p923_p0, %p920_p13 }
 0x2f5   :  { %928 = shalt.err (!%p925_p1)
}
 0x2f6   :  { %762 = dma.vmem_to_hbm [thread:$0]  %s760_s5, 16, %s1164_s7, [#allocation5]  }
 0x2f7   :  { %931 = dma.done.wait [#allocation5], 16  }
 0x2f8   :  { %932 = vsyncadd [#allocation5], 4294967280 }
 0x2f9   :  { %766 = vsyncpa [#allocation4], 1 }
 0x2fa   :  { %767 = vsyncpa [#allocation5], 1 }

</bundles_post_ra>
